<compile_context>
chip_gen: v5e
topology: v5e:2x2
jax: 0.10.0
libtpu: 0.0.40
codegen_flags: <defaults>
</compile_context>

<pallas_src>
import jax
import jax.numpy as jnp
from jax import lax
from jax.experimental import pallas as pl
from jax.experimental.pallas import tpu as pltpu


def _head_kernel(x_ref, wt_ref, b_ref, o_ref):
    # Transposed linear: (O, D_in) contracted with (TB, D_in) over D_in -> (O, TB).
    # Batch rides the lane axis, so everything downstream is lane-dense.
    z = lax.dot_general(
        wt_ref[...], x_ref[...],
        dimension_numbers=(((1,), (1,)), ((), ())),
        preferred_element_type=jnp.float32,
    )
    z = z + b_ref[...]  # b_ref is (O, 1): broadcasts along the batch/lane axis.

    # TODO(synk): Dropout(p=0.1) is identity at inference; training-mode
    # stochastic masking is intentionally not implemented.

    # Numerically stable softmax over the class axis (axis 0, 16 sublane rows).
    m = jnp.max(z, axis=0, keepdims=True)          # sublane reduce (XLU)
    e = jnp.exp(z - m)                             # EUP
    denom = jnp.sum(e, axis=0, keepdims=True)      # sublane reduce (XLU)
    # Exact divide: the EUP approx reciprocal's relative error broke the
    # probabilities-sum-to-1 property beyond 1e-3.  One divide per element
    # over O=16 rows is negligible next to the matmul.
    o_ref[...] = (e / denom).astype(o_ref.dtype)


def _pick_tb(d_in, o, itemsize, *, max_tb=512, vmem_budget=24 * 1024 * 1024):
    """Largest batch tile (multiple of 128, <= max_tb) whose working set fits VMEM.

    Budget ~ 2*TB*D_in (double-buffered x stream) + 2*O*D_in (weight) + 2*O*TB (out),
    kept under ~24 MiB so the pipeline stays deep even on v7x (64 MiB physical VMEM).
    """
    tb = max_tb
    while tb > 128:
        need = (2 * tb * d_in + 2 * o * d_in + 2 * o * tb + o) * itemsize
        if need <= vmem_budget:
            return tb
        tb -= 128
    return 128


def classification_head(x, w, b, *, block_b=512):
    """x: (B, D_in), w: (D_in, O), b: (O,) -> (B, O) softmax probabilities.

    Matches ClassificationHead.forward (eval mode). `w` is the transpose of
    PyTorch's nn.Linear weight (i.e. laid out (in_features, out_features)).
    """
    B, D_in = x.shape
    O = w.shape[1]
    out_dtype = x.dtype
    itemsize = jnp.dtype(x.dtype).itemsize

    # Lane-dense transposed operands (tiny one-off XLA transpose / reshape).
    wt = w.T                      # (O, D_in)
    b_col = b.reshape(O, 1)       # (O, 1)

    # Batch tiling. Small batches run as one full-array block (always legal);
    # large batches stream 128-aligned tiles so BlockSpec can double-buffer.
    if B <= block_b:
        TB = B
        B_pad = B
    else:
        TB = _pick_tb(D_in, O, itemsize, max_tb=block_b)
        B_pad = pl.cdiv(B, TB) * TB
    if B_pad != B:
        x = jnp.pad(x, ((0, B_pad - B), (0, 0)))  # zero rows -> softmax(b), sliced off

    grid = (B_pad // TB,)

    cost = pl.CostEstimate(
        flops=2 * B_pad * D_in * O,
        transcendentals=B_pad * O,
        bytes_accessed=(B_pad * D_in + O * D_in + O + B_pad * O) * itemsize,
    )

    # NOTE: weight/bias have constant index_maps so they stay VMEM-resident;
    # at D_in=256, O=16 the default 2-deep buffering of them is negligible.
    out_t = pl.pallas_call(
        _head_kernel,
        out_shape=jax.ShapeDtypeStruct((O, B_pad), out_dtype),
        grid=grid,
        in_specs=[
            pl.BlockSpec((TB, D_in), lambda i: (i, 0)),   # x: streamed over batch
            pl.BlockSpec((O, D_in), lambda i: (0, 0)),    # W^T: resident
            pl.BlockSpec((O, 1), lambda i: (0, 0)),       # bias: resident
        ],
        out_specs=pl.BlockSpec((O, TB), lambda i: (0, i)),  # lane-dense output slab
        compiler_params=pltpu.CompilerParams(
            dimension_semantics=("parallel",),            # batch tiles independent (v7x 2 TCs)
        ),
        cost_estimate=cost,
    )(x, wt, b_col)

    # Layout plumbing back to the module's (batch, classes) convention.
    return out_t[:, :B].T


def _reference(x, w, b):
    z = x @ w + b
    z = z - jnp.max(z, axis=-1, keepdims=True)
    e = jnp.exp(z)
    return e / jnp.sum(e, axis=-1, keepdims=True)


if __name__ == "__main__":
    # Shapes implied by the module: n_embeddings=8, embedding_dim=32, output_size=16
    n_embeddings, embedding_dim, output_size = 8, 32, 16
    in_features = n_embeddings * embedding_dim  # 256

    key = jax.random.PRNGKey(0)
    kw, kb, kx_small, kx_big = jax.random.split(key, 4)

    # Parameters (deterministic). Module init is N(0, 0.02) weights / zero bias;
    # a nonzero bias is used here so the bias broadcast path is actually exercised.
    w = 0.02 * jax.random.normal(kw, (in_features, output_size), jnp.float32)
    b = 0.02 * jax.random.normal(kb, (output_size,), jnp.float32)

    # Case 1: small batch (single full-array block). Case 2: large, non-multiple
    # batch exercising the tiled + padded + "parallel" grid path.
    for batch, kx in ((8, kx_small), (1000, kx_big)):
        x = jax.random.normal(kx, (batch, in_features), jnp.float32)
        out = jax.block_until_ready(classification_head(x, w, b))
        ref = _reference(x, w, b)

        assert out.shape == (batch, output_size)
        # Exact divide in the kernel -> rows sum to 1 to fp rounding.
        assert jnp.allclose(jnp.sum(out, axis=-1), 1.0, atol=1e-3)
        assert jnp.allclose(out, ref, atol=1e-3, rtol=1e-3), (
            batch, float(jnp.max(jnp.abs(out - ref))))

    print("KERNEL_OK")
</pallas_src>

<mosaic_0001>
module attributes {stable_mosaic.version = 11 : i64} {
  func.func @_head_kernel(%arg0: i32, %arg1: memref<8x256xf32, #tpu.memory_space<vmem>>, %arg2: memref<16x256xf32, #tpu.memory_space<vmem>>, %arg3: memref<16x1xf32, #tpu.memory_space<vmem>>, %arg4: memref<16x8xf32, #tpu.memory_space<vmem>>) attributes {dimension_semantics = [#tpu.dimension_semantics<parallel>], iteration_bounds = array<i64: 1>, scalar_prefetch = 0 : i64, scratch_operands = 0 : i64, tpu.core_type = #tpu.core_type<tc>, window_params = [{transform_indices = @transform_0, window_bounds = array<i64: 8, 256>}, {pipeline_mode = #tpu.pipeline_mode<synchronous>, transform_indices = @transform_1, window_bounds = array<i64: 16, 256>}, {pipeline_mode = #tpu.pipeline_mode<synchronous>, transform_indices = @transform_2, window_bounds = array<i64: 16, 1>}, {transform_indices = @transform_3, window_bounds = array<i64: 16, 8>}]} {
    %c0 = arith.constant 0 : index
    %c0_0 = arith.constant 0 : index
    %0 = vector.load %arg2[%c0, %c0_0] : memref<16x256xf32, #tpu.memory_space<vmem>>, vector<16x256xf32>
    %c0_1 = arith.constant 0 : index
    %c0_2 = arith.constant 0 : index
    %1 = vector.load %arg1[%c0_1, %c0_2] : memref<8x256xf32, #tpu.memory_space<vmem>>, vector<8x256xf32>
    %cst = arith.constant dense<0.000000e+00> : vector<16x8xf32>
    %2 = tpu.matmul %0, %1, %cst {dimension_numbers = #tpu.dot_dimension_numbers<[1], [1], [0], [0], [0, 0, 1, 0], [], []>} : vector<16x256xf32>, vector<8x256xf32>, vector<16x8xf32> -> vector<16x8xf32>
    %c0_3 = arith.constant 0 : index
    %c0_4 = arith.constant 0 : index
    %3 = vector.load %arg3[%c0_3, %c0_4] : memref<16x1xf32, #tpu.memory_space<vmem>>, vector<16x1xf32>
    %4 = vector.broadcast %3 : vector<16x1xf32> to vector<16x8xf32>
    %5 = arith.addf %2, %4 : vector<16x8xf32>
    %cst_5 = arith.constant dense<0xFF800000> : vector<8xf32>
    %6 = vector.multi_reduction <maximumf>, %5, %cst_5 [0] : vector<16x8xf32> to vector<8xf32>
    %7 = vector.shape_cast %6 : vector<8xf32> to vector<1x8xf32>
    %8 = vector.broadcast %7 : vector<1x8xf32> to vector<16x8xf32>
    %9 = arith.subf %5, %8 : vector<16x8xf32>
    %10 = math.exp %9 : vector<16x8xf32>
    %cst_6 = arith.constant dense<0.000000e+00> : vector<8xf32>
    %11 = vector.multi_reduction <add>, %10, %cst_6 [0] : vector<16x8xf32> to vector<8xf32>
    %12 = vector.shape_cast %11 : vector<8xf32> to vector<1x8xf32>
    %13 = vector.broadcast %12 : vector<1x8xf32> to vector<16x8xf32>
    %14 = arith.divf %10, %13 : vector<16x8xf32>
    %c0_7 = arith.constant 0 : index
    %c0_8 = arith.constant 0 : index
    %15 = vector.load %arg4[%c0_7, %c0_8] : memref<16x8xf32, #tpu.memory_space<vmem>>, vector<16x8xf32>
    tpu.vector_store %arg4[%c0_7, %c0_8], %14 {strides = array<i32>} : memref<16x8xf32, #tpu.memory_space<vmem>>, vector<16x8xf32>,
    return
  }
  func.func @transform_0(%arg0: i32) -> (i32, i32) {
    %c0_i32 = arith.constant 0 : i32
    %c0_i32_0 = arith.constant 0 : i32
    return %arg0, %c0_i32 : i32, i32
  }
  func.func @transform_1(%arg0: i32) -> (i32, i32) {
    %c0_i32 = arith.constant 0 : i32
    %c0_i32_0 = arith.constant 0 : i32
    %c0_i32_1 = arith.constant 0 : i32
    return %c0_i32, %c0_i32_0 : i32, i32
  }
  func.func @transform_2(%arg0: i32) -> (i32, i32) {
    %c0_i32 = arith.constant 0 : i32
    %c0_i32_0 = arith.constant 0 : i32
    %c0_i32_1 = arith.constant 0 : i32
    return %c0_i32, %c0_i32_0 : i32, i32
  }
  func.func @transform_3(%arg0: i32) -> (i32, i32) {
    %c0_i32 = arith.constant 0 : i32
    %c0_i32_0 = arith.constant 0 : i32
    return %c0_i32, %arg0 : i32, i32
  }
}

</mosaic_0001>

<bundles_post_ra>
// kernel: tpu_custom_call.1
= control target key start
LH: loop header
LB: loop body
LE: loop exit
PB: predicated region body
PF: predicated region fallthrough
CT: control target
= control target key end

     0   :  { %8 = vsyncpa [#allocation3], 0  ;;  %s181_s15 = smov [#allocation2]   ;;  %s182_s17 = smov 256   ;;  %s232_s0 = inlined_call_operand.vmem [shape: f32[8,256], index: 0, kind: input, shape index: {}]   ;;  %s233_s1 = inlined_call_operand.hbm [shape: f32[16,256], index: 1, kind: input, shape index: {}]   ;;  %s234_s2 = inlined_call_operand.vmem [shape: f32[16,1], index: 2, kind: input, shape index: {}]   ;;  %s235_s3 = inlined_call_operand.vmem [shape: f32[16,8], index: 3, kind: output, shape index: {}]  }
   0x1   :  { %s15_s14 = sshll.u32 %s233_s1, 4  ;;  %s17_s16 = sshll.u32 %s181_s15, 4  ;;  %s16_s14 = int_to_ptr.hbm [resolvable:$true] %s15_s14  ;;  %s18_s16 = int_to_ptr.vmem [resolvable:$true] %s17_s16 }
   0x2   :  { %s183_s18 = smov 16  }
   0x3   :  { %23 = dma.hbm_to_vmem [thread:$0]  %s16_s14, 512, %s18_s16, [#allocation3], %s182_s17, %s182_s17, %s183_s18  }
   0x4   :  { %179 = dma.done.wait [#allocation3], 512  }
   0x5   :  { %180 = vsyncadd [#allocation3], 4294966784  ;;  %v184_v0 = vmov 0   ;;  %v34_v1 = vld [vmem:[%s232_s0] sm:$0xff]  ;;  %v35_v2 = vld [vmem:[%s232_s0 + $0x8] sm:$0xff]  ;;  %vm94_vm0 = vcmask 64512  }
   0x6   :  { %148 = vset.pattern.permute.xlu0 %v184_v0  ;;  %63 = vmatpush.xpose.msra.mxu0 %v34_v1  ;;  %v30_v3 = vld [vmem:[#allocation2] sm:$0xff]  ;;  %v32_v4 = vld [vmem:[#allocation2 + $0x10] sm:$0xff]  ;;  %v31_v6 = vld [vmem:[#allocation2 + $0x8] sm:$0xff] }
   0x7   :  { %142 = vmatpush.xpose.msra.mxu2 %v34_v1  ;;  %v36_v5 = vld [vmem:[%s234_s2] sm:$0xff]  ;;  %86 = vmatpush.xpose.msra.mxu1 %v35_v2  ;;  %v33_v7 = vld [vmem:[#allocation2 + $0x18] sm:$0xff]  ;;  %v37_v8 = vld [vmem:[%s234_s2 + $0x8] sm:$0xff] }
   0x8   :  { %143 = vmatpush.xpose.msra.mxu3 %v35_v2  ;;  %40 = vperm.xlu0 %148, %v36_v5  }
   0x9   :  { %64 = vmatmul.f32.vlgmr.msra.gmra.mxu0 %v30_v3 }
   0xa   :  { %67 = vmatmul.f32.vlgmr.msra.gmra.mxu2 %v32_v4  ;;  %87 = vmatmul.f32.vlgmr.msra.gmra.mxu1 %v31_v6 }
   0xb   :  { %90 = vmatmul.f32.vlgmr.msra.gmra.mxu3 %v33_v7 }
  0x10   :  { %45 = vperm.xlu0 %148, %v37_v8  }
  0x7a   :  { %v41_v9 = vpop.permute.xlu0 %40 }
  0x82   :  { %v46_v13 = vpop.permute.xlu0 %45 }
  0x86   :  { %v65_v10 = vpop.f32.mrf.mxu0 }
  0x87   :  { %v66_v11 = vadd.f32 %v65_v10, %v41_v9  ;;  %v88_v12 = vpop.f32.mrf.mxu1 }
  0x89   :  { %v89_v15 = vadd.f32 %v88_v12, %v66_v11 }
  0x8b   :  { %v95_v19 = vsel %vm94_vm0, %v89_v15, -inf }
  0x8d   :  { %v68_v14 = vpop.f32.mrf.mxu2 }
  0x8e   :  { %v69_v16 = vadd.f32 %v68_v14, %v46_v13  ;;  %v91_v17 = vpop.f32.mrf.mxu3 }
  0x90   :  { %v92_v18 = vadd.f32 %v91_v17, %v69_v16 }
  0x92   :  { %v96_v20 = vsel %vm94_vm0, %v92_v18, -inf }
  0x93   :  { %v97_v21 = vmax.f32 %v95_v19, %v96_v20 }
  0x95   :  { %v98_v22 = vrot.slane %v97_v21, 4 }
  0x97   :  { %v99_v23 = vmax.f32 %v97_v21, %v98_v22 }
  0x99   :  { %v100_v24 = vrot.slane %v99_v23, 2 }
  0x9b   :  { %v101_v25 = vmax.f32 %v99_v23, %v100_v24 }
  0x9d   :  { %v102_v26 = vrot.slane %v101_v25, 1 }
  0x9f   :  { %v103_v27 = vmax.f32 %v101_v25, %v102_v26 }
  0xa1   :  { %v104_v28 = vsub.f32 %v89_v15, %v103_v27  ;;  %v105_v29 = vsub.f32 %v92_v18, %v103_v27 }
  0xa3   :  { %v106_v30 = vmul.f32 1.442695, %v104_v28  ;;  %v108_v31 = vmul.f32 1.442695, %v105_v29 }
  0xa5   :  { %149 = vpow2.f32 %v106_v30 }
  0xa6   :  { %151 = vpow2.f32 %v108_v31 }
  0xab   :  { %v150_v32 = vpop.eup %149 }
  0xac   :  { %v152_v33 = vpop.eup %151  ;;  %v110_v34 = vsel %vm94_vm0, %v150_v32, 0.0 }
  0xad   :  { %v111_v35 = vsel %vm94_vm0, %v152_v33, 0.0 }
  0xae   :  { %v112_v36 = vadd.f32 %v111_v35, %v110_v34 }
  0xb0   :  { %v113_v37 = vrot.slane %v112_v36, 4 }
  0xb2   :  { %v114_v38 = vadd.f32 %v113_v37, %v112_v36 }
  0xb4   :  { %v115_v39 = vrot.slane %v114_v38, 2 }
  0xb6   :  { %v116_v40 = vadd.f32 %v115_v39, %v114_v38 }
  0xb8   :  { %v117_v41 = vrot.slane %v116_v40, 1 }
  0xba   :  { %v118_v42 = vadd.f32 %v117_v41, %v116_v40 }
  0xbc   :  { %153 = vrcp.f32 %v118_v42  ;;  %v130_v46 = vand.u32 2147483648, %v118_v42  ;;  %v128_v48 = vand.u32 2147483647, %v118_v42  ;;  %vm124_vm2 = vweird.f32 %v118_v42 }
  0xbe   :  { %v131_v50 = vor.u32 1.1754944e-38, %v130_v46  ;;  %vm129_vm4 = vcmp.eq.f32.partialorder %v128_v48, 8.507059e+37 }
  0xc2   :  { %v154_v43 = vpop.eup %153 }
  0xc3   :  { %v120_v44 = vmul.f32 %v154_v43, %v118_v42  ;;  %vm125_vm1 = vweird.f32 %v154_v43 }
  0xc4   :  { %vm126_vm3 = vmor %vm124_vm2, %vm125_vm1 }
  0xc5   :  { %v121_v45 = vsub.f32 1.0, %v120_v44 }
  0xc7   :  { %v122_v47 = vmul.f32 %v154_v43, %v121_v45 }
  0xc9   :  { %v123_v49 = vadd.f32 %v154_v43, %v122_v47 }
  0xcb   :  { %v127_v51 = vsel %vm126_vm3, %v154_v43, %v123_v49 }
  0xcc   :  { %v132_v52 = vsel %vm129_vm4, %v131_v50, %v127_v51 }
  0xcd   :  { %v133_v53 = vmul.f32 %v150_v32, %v132_v52  ;;  %v134_v54 = vmul.f32 %v152_v33, %v132_v52 }
  0xcf   :  { %135 = vst.msk [vmem:[%s235_s3] sm:$0xff] %vm94_vm0, %v133_v53 }
  0xd0   :  { %136 = vst.msk [vmem:[%s235_s3 + $0x8] sm:$0xff] %vm94_vm0, %v134_v54 }
  0xd1   :  { %141 = vsyncpa [#allocation3], 1 }

</bundles_post_ra>
